<compile_context>
chip_gen: v5e
topology: v5e:2x2
jax: 0.10.0
libtpu: 0.0.40
codegen_flags: <defaults>
</compile_context>

<pallas_src>
import functools

import jax
import jax.numpy as jnp
from jax import lax
from jax.experimental import pallas as pl
from jax.experimental.pallas import tpu as pltpu


def _round_up(x, m):
    return ((x + m - 1) // m) * m


def _sublane_multiple(dtype):
    isz = jnp.dtype(dtype).itemsize
    return {4: 8, 2: 16, 1: 32}.get(isz, 8)


def _physical_vmem_bytes():
    try:
        return int(pltpu.get_tpu_info().vmem_capacity_bytes)
    except Exception:
        return 64 * 1024 * 1024      # conservative: v7x per-TensorCore VMEM


def _num_tensorcores():
    try:
        return max(1, int(getattr(jax.devices()[0], "num_cores", 1)))
    except Exception:
        return 1


def _pick_bn(vocab, block_vocab):
    """Lane-dense (multiple-of-128) vocab tile minimising padded columns."""
    vocab128 = _round_up(vocab, 128)
    hi = min(_round_up(block_vocab, 128), vocab128)
    best_bn, best_pad = 128, None
    for bn in range(128, hi + 1, 128):
        pad = _round_up(vocab, bn) - vocab
        if best_pad is None or pad < best_pad or (pad == best_pad and bn > best_bn):
            best_bn, best_pad = bn, pad
    return best_bn


def _block_spec(shape, index_map, buffers=None):
    """BlockSpec with optional pipeline_mode; falls back if unsupported."""
    if buffers is not None:
        try:
            return pl.BlockSpec(shape, index_map,
                                pipeline_mode=pl.Buffered(buffers))
        except (TypeError, AttributeError):
            pass
    return pl.BlockSpec(shape, index_map)


def _tree_head_kernel(x_ref, w1_ref, ln_ref, w2_ref, b2_ref, o_ref, h_ref, *,
                      eps):
    # ---- dense + GELU + LayerNorm: once per row tile (first vocab tile) ----
    # Correct only because the vocab axis is innermost and "arbitrary".
    @pl.when(pl.program_id(1) == 0)
    def _():
        h = jnp.dot(x_ref[...], w1_ref[...],
                    preferred_element_type=jnp.float32)
        h = h + ln_ref[0:1, :]                      # dense bias (f32)

        # exact GELU (matches torch.nn.functional.gelu): 0.5*x*(1+erf(x/sqrt(2)))
        h = 0.5 * h * (1.0 + lax.erf(h * 0.7071067811865476))

        # LayerNorm over the hidden (lane) axis, biased variance, eps inside rsqrt
        mean = jnp.mean(h, axis=-1, keepdims=True)
        cent = h - mean
        var = jnp.mean(cent * cent, axis=-1, keepdims=True)
        h = cent * lax.rsqrt(var + eps) * ln_ref[1:2, :] + ln_ref[2:3, :]

        h_ref[...] = h.astype(h_ref.dtype)

    # ---- decoder matmul against this vocab tile of W2 (reuses cached h) ----
    out = jnp.dot(h_ref[...], w2_ref[...], preferred_element_type=jnp.float32)
    o_ref[...] = (out + b2_ref[...]).astype(o_ref.dtype)


def tree_prediction_head(features, params, *, eps=1e-5, block_rows=512,
                         block_vocab=512, compute_dtype=jnp.bfloat16,
                         num_cores=None):
    """features: (batch, seq, hidden) -> logits (batch, seq, tree_vocab)."""
    b, s, hidden = features.shape
    w1_t, b1, gamma, beta, w2_t, b2 = params
    vocab = w2_t.shape[1]
    out_dtype = features.dtype

    if compute_dtype is None:
        compute_dtype = features.dtype
    compute_dtype = jnp.dtype(compute_dtype)
    cdsz = compute_dtype.itemsize
    odsz = jnp.dtype(out_dtype).itemsize

    rows = b * s
    # MXU operands in compute dtype (bf16 by default); small vectors stay f32.
    x2d = features.reshape(rows, hidden).astype(compute_dtype)
    w1_c = w1_t.astype(compute_dtype)
    w2_c = w2_t.astype(compute_dtype)
    ln_pack = jnp.stack([b1.reshape(-1), gamma.reshape(-1),
                         beta.reshape(-1)]).astype(jnp.float32)   # (3, H)
    b2_f32 = b2.reshape(1, -1).astype(jnp.float32)                # (1, V)

    # ---- row tiling: large tiles, dtype-native sublane alignment ----
    row_align = _sublane_multiple(compute_dtype)
    bm = min(_round_up(block_rows, row_align), _round_up(rows, row_align))

    # v7x megacore: make sure both TensorCores get at least one row tile.
    if num_cores is None:
        num_cores = _num_tensorcores()
    if num_cores >= 2 and _round_up(rows, bm) // bm < 2 and rows >= 2 * row_align:
        bm = _round_up(pl.cdiv(rows, 2), row_align)

    # ---- vocab tiling: lane-dense, minimal padding ----
    bn = _pick_bn(vocab, block_vocab)

    # ---- VMEM budget (cap below physical VMEM; auto-shrink tiles to fit) ----
    w1_buffers, w2_buffers = 1, 3   # single-buffer invariant W1, triple-buffer W2

    def vmem_est(bm_, bn_):
        return (2 * bm_ * hidden * cdsz              # x tile (double-buffered)
                + w1_buffers * hidden * hidden * cdsz
                + 2 * 3 * hidden * 4                 # packed b1/gamma/beta
                + w2_buffers * hidden * bn_ * cdsz   # W2 tile buffers
                + 2 * bn_ * 4                        # b2 tile
                + 2 * bm_ * bn_ * odsz               # out tile
                + bm_ * hidden * cdsz)               # cached h scratch

    vmem_cap = int(_physical_vmem_bytes() * 0.8)
    while (int(vmem_est(bm, bn) * 1.25) > vmem_cap
           and (bm > row_align or bn > 128)):
        if bm > row_align:
            bm = max(row_align, _round_up(bm // 2, row_align))
        else:
            bn = max(128, _round_up(bn // 2, 128))

    rows_p = _round_up(rows, bm)
    vocab_p = _round_up(vocab, bn)
    if rows_p != rows:
        x2d = jnp.pad(x2d, ((0, rows_p - rows), (0, 0)))
    if vocab_p != vocab:
        w2_c = jnp.pad(w2_c, ((0, 0), (0, vocab_p - vocab)))
        b2_f32 = jnp.pad(b2_f32, ((0, 0), (0, vocab_p - vocab)))

    grid = (rows_p // bm, vocab_p // bn)
    vmem_limit = int(min(max(32 * 1024 * 1024, int(vmem_est(bm, bn) * 1.25)),
                         vmem_cap))

    cost = pl.CostEstimate(
        flops=2 * rows_p * hidden * (hidden + vocab_p),
        transcendentals=rows_p * hidden,
        bytes_accessed=(rows_p * hidden * cdsz                    # x
                        + hidden * hidden * cdsz                  # W1 (resident)
                        + grid[0] * hidden * vocab_p * cdsz       # W2 re-stream/row tile
                        + rows_p * vocab_p * odsz                 # logits
                        + (3 * hidden + vocab_p) * 4),            # small vectors
    )

    kernel = functools.partial(_tree_head_kernel, eps=eps)

    def build(use_pipeline_modes):
        w1_buf = w1_buffers if use_pipeline_modes else None
        w2_buf = w2_buffers if use_pipeline_modes else None
        return pl.pallas_call(
            kernel,
            out_shape=jax.ShapeDtypeStruct((rows_p, vocab_p), out_dtype),
            grid_spec=pltpu.PrefetchScalarGridSpec(
                num_scalar_prefetch=0,
                grid=grid,
                in_specs=[
                    pl.BlockSpec((bm, hidden), lambda i, n: (i, 0)),           # x tile
                    _block_spec((hidden, hidden), lambda i, n: (0, 0), w1_buf),  # W1^T (invariant)
                    pl.BlockSpec((3, hidden), lambda i, n: (0, 0)),            # b1/gamma/beta
                    _block_spec((hidden, bn), lambda i, n: (0, n), w2_buf),    # W2^T tile
                    pl.BlockSpec((1, bn), lambda i, n: (0, n)),                # b2 tile
                ],
                out_specs=pl.BlockSpec((bm, bn), lambda i, n: (i, n)),
                scratch_shapes=[pltpu.VMEM((bm, hidden), compute_dtype)],      # cached h
            ),
            compiler_params=pltpu.CompilerParams(
                dimension_semantics=("parallel", "arbitrary"),
                vmem_limit_bytes=vmem_limit),
            cost_estimate=cost,
        )

    try:
        out2d = build(True)(x2d, w1_c, ln_pack, w2_c, b2_f32)
    except Exception:
        # Fallback if this JAX build rejects BlockSpec pipeline_mode / Buffered.
        out2d = build(False)(x2d, w1_c, ln_pack, w2_c, b2_f32)

    return out2d[:rows, :vocab].reshape(b, s, vocab)


def init_params(key, hidden, vocab, dtype=jnp.float32):
    """Deterministic synthetic parameters (shapes match the nn.Module)."""
    k1, k2 = jax.random.split(key, 2)
    # nn.Linear(H, H): weight (H, H); pass transposed (in, out).
    w1_t = jax.random.normal(k1, (hidden, hidden), dtype) * 0.02
    b1 = jnp.zeros((1, hidden), dtype)
    # nn.LayerNorm(H): gamma=1, beta=0
    gamma = jnp.ones((1, hidden), dtype)
    beta = jnp.zeros((1, hidden), dtype)
    # nn.Linear(H, V): weight (V, H); pass transposed (H, V).
    w2_t = jax.random.normal(k2, (hidden, vocab), dtype) * 0.02
    # self.bias = zeros(V), tied to decoder.bias
    b2 = jnp.zeros((1, vocab), dtype)
    return (w1_t, b1, gamma, beta, w2_t, b2)


def reference(features, params, eps=1e-5):
    w1_t, b1, gamma, beta, w2_t, b2 = params
    x = features.astype(jnp.float32)
    h = x @ w1_t.astype(jnp.float32) + b1.astype(jnp.float32)
    h = 0.5 * h * (1.0 + lax.erf(h * 0.7071067811865476))
    mean = jnp.mean(h, axis=-1, keepdims=True)
    var = jnp.mean((h - mean) ** 2, axis=-1, keepdims=True)
    h = (h - mean) * lax.rsqrt(var + eps) * gamma + beta
    return (h @ w2_t.astype(jnp.float32) + b2).astype(features.dtype)


if __name__ == "__main__":
    batch, seq, hidden, tree_vocab = 2, 8, 32, 64
    key = jax.random.PRNGKey(0)
    k_x, k_p = jax.random.split(key)

    features = jax.random.normal(k_x, (batch, seq, hidden), jnp.float32)
    params = init_params(k_p, hidden, tree_vocab)
    ref = reference(features, params)

    # Exact-precision path (f32 MXU operands): tight tolerance vs reference.
    out_f32 = tree_prediction_head(features, params, eps=1e-5,
                                   compute_dtype=jnp.float32)
    out_f32 = jax.block_until_ready(out_f32)
    assert out_f32.shape == (batch, seq, tree_vocab)
    assert jnp.allclose(out_f32, ref, atol=1e-4, rtol=1e-4), "f32 path mismatch"

    # Default fast path: bf16 MXU operands, f32 accumulation + GELU/LN math.
    out_bf16 = tree_prediction_head(features, params, eps=1e-5)
    out_bf16 = jax.block_until_ready(out_bf16)
    assert out_bf16.shape == (batch, seq, tree_vocab)
    assert jnp.allclose(out_bf16, ref, atol=3e-2, rtol=3e-2), "bf16 path mismatch"

    print("KERNEL_OK")
</pallas_src>

<mosaic_0001>
module attributes {stable_mosaic.version = 11 : i64} {
  func.func @_tree_head_kernel(%arg0: i32, %arg1: i32, %arg2: memref<16x32xf32, #tpu.memory_space<vmem>>, %arg3: memref<32x32xf32, #tpu.memory_space<vmem>>, %arg4: memref<3x32xf32, #tpu.memory_space<vmem>>, %arg5: memref<32x128xf32, #tpu.memory_space<vmem>>, %arg6: memref<1x128xf32, #tpu.memory_space<vmem>>, %arg7: memref<16x128xf32, #tpu.memory_space<vmem>>, %arg8: memref<16x32xf32, #tpu.memory_space<vmem>>) attributes {dimension_semantics = [#tpu.dimension_semantics<parallel>, #tpu.dimension_semantics<arbitrary>], iteration_bounds = array<i64: 1, 1>, scalar_prefetch = 0 : i64, scratch_operands = 1 : i64, tpu.core_type = #tpu.core_type<tc>, window_params = [{transform_indices = @transform_0, window_bounds = array<i64: 16, 32>}, {pipeline_mode = #tpu.pipeline_mode<synchronous>, transform_indices = @transform_1, window_bounds = array<i64: 32, 32>}, {pipeline_mode = #tpu.pipeline_mode<synchronous>, transform_indices = @transform_2, window_bounds = array<i64: 3, 32>}, {transform_indices = @transform_3, window_bounds = array<i64: 32, 128>}, {transform_indices = @transform_4, window_bounds = array<i64: 1, 128>}, {transform_indices = @transform_5, window_bounds = array<i64: 16, 128>}]} {
    %c0_i32 = arith.constant 0 : i32
    %0 = arith.cmpi eq, %arg1, %c0_i32 : i32
    %1 = arith.extui %0 : i1 to i32
    %c0_i32_0 = arith.constant 0 : i32
    %2 = arith.cmpi ne, %1, %c0_i32_0 : i32
    scf.if %2 {
      %c0_8 = arith.constant 0 : index
      %c0_9 = arith.constant 0 : index
      %10 = vector.load %arg2[%c0_8, %c0_9] : memref<16x32xf32, #tpu.memory_space<vmem>>, vector<16x32xf32>
      %c0_10 = arith.constant 0 : index
      %c0_11 = arith.constant 0 : index
      %11 = vector.load %arg3[%c0_10, %c0_11] : memref<32x32xf32, #tpu.memory_space<vmem>>, vector<32x32xf32>
      %cst_12 = arith.constant dense<0.000000e+00> : vector<16x32xf32>
      %12 = tpu.matmul %10, %11, %cst_12 {dimension_numbers = #tpu.dot_dimension_numbers<[1], [0], [0], [1], [0, 0, 1, 1], [], []>} : vector<16x32xf32>, vector<32x32xf32>, vector<16x32xf32> -> vector<16x32xf32>
      %c0_13 = arith.constant 0 : index
      %c0_14 = arith.constant 0 : index
      %13 = vector.load %arg4[%c0_13, %c0_14] : memref<3x32xf32, #tpu.memory_space<vmem>>, vector<1x32xf32>
      %14 = vector.broadcast %13 : vector<1x32xf32> to vector<16x32xf32>
      %15 = arith.addf %12, %14 : vector<16x32xf32>
      %cst_15 = arith.constant 5.000000e-01 : f32
      %16 = vector.broadcast %cst_15 : f32 to vector<16x32xf32>
      %17 = arith.mulf %16, %15 : vector<16x32xf32>
      %cst_16 = arith.constant 0.707106769 : f32
      %18 = vector.broadcast %cst_16 : f32 to vector<16x32xf32>
      %19 = arith.mulf %15, %18 : vector<16x32xf32>
      %20 = math.erf %19 : vector<16x32xf32>
      %cst_17 = arith.constant 1.000000e+00 : f32
      %21 = vector.broadcast %cst_17 : f32 to vector<16x32xf32>
      %22 = arith.addf %21, %20 : vector<16x32xf32>
      %23 = arith.mulf %17, %22 : vector<16x32xf32>
      %cst_18 = arith.constant dense<0.000000e+00> : vector<16xf32>
      %24 = vector.multi_reduction <add>, %23, %cst_18 [1] : vector<16x32xf32> to vector<16xf32>
      %25 = vector.shape_cast %24 : vector<16xf32> to vector<16x1xf32>
      %cst_19 = arith.constant 3.200000e+01 : f32
      %26 = vector.broadcast %cst_19 : f32 to vector<16x1xf32>
      %27 = arith.divf %25, %26 : vector<16x1xf32>
      %28 = vector.broadcast %27 : vector<16x1xf32> to vector<16x32xf32>
      %29 = arith.subf %23, %28 : vector<16x32xf32>
      %30 = arith.mulf %29, %29 : vector<16x32xf32>
      %cst_20 = arith.constant dense<0.000000e+00> : vector<16xf32>
      %31 = vector.multi_reduction <add>, %30, %cst_20 [1] : vector<16x32xf32> to vector<16xf32>
      %32 = vector.shape_cast %31 : vector<16xf32> to vector<16x1xf32>
      %cst_21 = arith.constant 3.200000e+01 : f32
      %33 = vector.broadcast %cst_21 : f32 to vector<16x1xf32>
      %34 = arith.divf %32, %33 : vector<16x1xf32>
      %cst_22 = arith.constant 9.99999974E-6 : f32
      %35 = vector.broadcast %cst_22 : f32 to vector<16x1xf32>
      %36 = arith.addf %34, %35 : vector<16x1xf32>
      %37 = math.rsqrt %36 : vector<16x1xf32>
      %38 = vector.broadcast %37 : vector<16x1xf32> to vector<16x32xf32>
      %39 = arith.mulf %29, %38 : vector<16x32xf32>
      %c1 = arith.constant 1 : index
      %c0_23 = arith.constant 0 : index
      %40 = vector.load %arg4[%c1, %c0_23] : memref<3x32xf32, #tpu.memory_space<vmem>>, vector<1x32xf32>
      %41 = vector.broadcast %40 : vector<1x32xf32> to vector<16x32xf32>
      %42 = arith.mulf %39, %41 : vector<16x32xf32>
      %c2 = arith.constant 2 : index
      %c0_24 = arith.constant 0 : index
      %43 = vector.load %arg4[%c2, %c0_24] : memref<3x32xf32, #tpu.memory_space<vmem>>, vector<1x32xf32>
      %44 = vector.broadcast %43 : vector<1x32xf32> to vector<16x32xf32>
      %45 = arith.addf %42, %44 : vector<16x32xf32>
      %c0_25 = arith.constant 0 : index
      %c0_26 = arith.constant 0 : index
      %46 = vector.load %arg8[%c0_25, %c0_26] : memref<16x32xf32, #tpu.memory_space<vmem>>, vector<16x32xf32>
      tpu.vector_store %arg8[%c0_25, %c0_26], %45 {strides = array<i32>} : memref<16x32xf32, #tpu.memory_space<vmem>>, vector<16x32xf32>,
    } else {
    }
    %c0 = arith.constant 0 : index
    %c0_1 = arith.constant 0 : index
    %3 = vector.load %arg8[%c0, %c0_1] : memref<16x32xf32, #tpu.memory_space<vmem>>, vector<16x32xf32>
    %c0_2 = arith.constant 0 : index
    %c0_3 = arith.constant 0 : index
    %4 = vector.load %arg5[%c0_2, %c0_3] : memref<32x128xf32, #tpu.memory_space<vmem>>, vector<32x128xf32>
    %cst = arith.constant dense<0.000000e+00> : vector<16x128xf32>
    %5 = tpu.matmul %3, %4, %cst {dimension_numbers = #tpu.dot_dimension_numbers<[1], [0], [0], [1], [0, 0, 1, 1], [], []>} : vector<16x32xf32>, vector<32x128xf32>, vector<16x128xf32> -> vector<16x128xf32>
    %c0_4 = arith.constant 0 : index
    %c0_5 = arith.constant 0 : index
    %6 = vector.load %arg6[%c0_4, %c0_5] : memref<1x128xf32, #tpu.memory_space<vmem>>, vector<1x128xf32>
    %7 = vector.broadcast %6 : vector<1x128xf32> to vector<16x128xf32>
    %8 = arith.addf %5, %7 : vector<16x128xf32>
    %c0_6 = arith.constant 0 : index
    %c0_7 = arith.constant 0 : index
    %9 = vector.load %arg7[%c0_6, %c0_7] : memref<16x128xf32, #tpu.memory_space<vmem>>, vector<16x128xf32>
    tpu.vector_store %arg7[%c0_6, %c0_7], %8 {strides = array<i32>} : memref<16x128xf32, #tpu.memory_space<vmem>>, vector<16x128xf32>,
    return
  }
  func.func @transform_0(%arg0: i32, %arg1: i32) -> (i32, i32) {
    %c0_i32 = arith.constant 0 : i32
    %c0_i32_0 = arith.constant 0 : i32
    return %arg0, %c0_i32 : i32, i32
  }
  func.func @transform_1(%arg0: i32, %arg1: i32) -> (i32, i32) {
    %c0_i32 = arith.constant 0 : i32
    %c0_i32_0 = arith.constant 0 : i32
    %c0_i32_1 = arith.constant 0 : i32
    return %c0_i32, %c0_i32_0 : i32, i32
  }
  func.func @transform_2(%arg0: i32, %arg1: i32) -> (i32, i32) {
    %c0_i32 = arith.constant 0 : i32
    %c0_i32_0 = arith.constant 0 : i32
    %c0_i32_1 = arith.constant 0 : i32
    return %c0_i32, %c0_i32_0 : i32, i32
  }
  func.func @transform_3(%arg0: i32, %arg1: i32) -> (i32, i32) {
    %c0_i32 = arith.constant 0 : i32
    %c0_i32_0 = arith.constant 0 : i32
    return %c0_i32, %arg1 : i32, i32
  }
  func.func @transform_4(%arg0: i32, %arg1: i32) -> (i32, i32) {
    %c0_i32 = arith.constant 0 : i32
    %c0_i32_0 = arith.constant 0 : i32
    return %c0_i32, %arg1 : i32, i32
  }
  func.func @transform_5(%arg0: i32, %arg1: i32) -> (i32, i32) {
    %c0_i32 = arith.constant 0 : i32
    return %arg0, %arg1 : i32, i32
  }
}

</mosaic_0001>

<bundles_post_ra>
// kernel: tpu_custom_call.1
= control target key start
LH: loop header
LB: loop body
LE: loop exit
PB: predicated region body
PF: predicated region fallthrough
CT: control target
= control target key end

     0   :  { %10 = vsyncpa [#allocation4], 0  ;;  %s596_s0 = inlined_call_operand.hbm [shape: f32[16,32], index: 0, kind: input, shape index: {}]   ;;  %s597_s1 = inlined_call_operand.hbm [shape: f32[32,32], index: 1, kind: input, shape index: {}]   ;;  %s598_s2 = inlined_call_operand.hbm [shape: f32[3,32], index: 2, kind: input, shape index: {}]   ;;  %s599_s3 = inlined_call_operand.hbm [shape: f32[32,128], index: 3, kind: input, shape index: {}]   ;;  %s600_s4 = inlined_call_operand.vmem [shape: f32[1,128], index: 4, kind: input, shape index: {}]   ;;  %s601_s5 = inlined_call_operand.hbm [shape: f32[16,128], index: 5, kind: output, shape index: {}]  }
   0x1   :  { %11 = vsyncpa [#allocation7], 0 }
   0x2   :  { %12 = vsyncpa [#allocation10], 0 }
   0x3   :  { %13 = vsyncpa [#allocation5], 0  ;;  %s31_s20 = sshll.u32 %s597_s1, 4  ;;  %s500_s21 = smov [#allocation6]   ;;  %s32_s20 = int_to_ptr.hbm [resolvable:$true] %s31_s20 }
   0x4   :  { %s33_s22 = sshll.u32 %s500_s21, 4  ;;  %s18_s25 = sshll.u32 %s596_s0, 4  ;;  %s34_s22 = int_to_ptr.vmem [resolvable:$true] %s33_s22  ;;  %s19_s25 = int_to_ptr.hbm [resolvable:$true] %s18_s25 }
   0x5   :  { %s501_s26 = smov 128   ;;  %s502_s27 = smov 8  }
   0x6   :  { %39 = dma.hbm_to_vmem [thread:$0]  %s32_s20, 512, %s34_s22, [#allocation7], %s501_s26, %s501_s26, %s502_s27  }
   0x7   :  { %s503_s28 = smov [#allocation3]   ;;  %s45_s1 = sshll.u32 %s598_s2, 4  ;;  %s46_s1 = int_to_ptr.hbm [resolvable:$true] %s45_s1 }
   0x8   :  { %s20_s29 = sshll.u32 %s503_s28, 4  ;;  %s55_s8 = sshll.u32 %s599_s3, 4  ;;  %s21_s29 = int_to_ptr.vmem [resolvable:$true] %s20_s29  ;;  %s56_s8 = int_to_ptr.hbm [resolvable:$true] %s55_s8 }
   0x9   :  { %26 = dma.hbm_to_vmem [thread:$0]  %s19_s25, 256, %s21_s29, [#allocation4], %s501_s26, %s501_s26, %s502_s27  }
   0xa   :  { %s504_s9 = smov [#allocation8]   ;;  %s505_s11 = smov [#allocation9]  }
   0xb   :  { %s47_s10 = sshll.u32 %s504_s9, 4  ;;  %s57_s12 = sshll.u32 %s505_s11, 4  ;;  %s48_s10 = int_to_ptr.vmem [resolvable:$true] %s47_s10  ;;  %s58_s12 = int_to_ptr.vmem [resolvable:$true] %s57_s12 }
   0xc   :  { %50 = dma.hbm_to_vmem [thread:$0]  %s46_s1, 64, %s48_s10, [#allocation7]  }
   0xd   :  { %63 = dma.hbm_to_vmem [thread:$0]  %s56_s8, 512, %s58_s12, [#allocation10], %s501_s26, %s501_s26, %s502_s27  }
   0xe   :  { %492 = dma.done.wait [#allocation4], 256  }
   0xf   :  { %493 = vsyncadd [#allocation4], 4294967040 }
  0x10   :  { %494 = dma.done.wait [#allocation7], 576  }
  0x11   :  { %495 = vsyncadd [#allocation7], 4294966720 }
  0x12   :  { %496 = dma.done.wait [#allocation10], 512  }
  0x13   :  { %497 = vsyncadd [#allocation10], 4294966784  ;;  %v91_v0 = vld [vmem:[#allocation6 + $0x18] sm:$0xff]  ;;  %v90_v1 = vld [vmem:[#allocation6 + $0x10] sm:$0xff]  ;;  %vm94_vm0 = vcmask 261120   ;;  %s507_s13 = smov [#allocation11]  }
  0x14   :  { %113 = vmatpush.msra.mxu0 %v91_v0  ;;  %342 = vmatpush.msra.mxu2 %v91_v0  ;;  %v89_v2 = vld [vmem:[#allocation6 + $0x8] sm:$0xff]  ;;  %v88_v3 = vld [vmem:[#allocation6] sm:$0xff]  ;;  %v86_v4 = vld [vmem:[#allocation3] sm:$0xff]  ;;  %s319_s14 = sshll.u32 %s507_s13, 4  ;;  %s321_s17 = sshll.u32 %s601_s5, 4  ;;  %s320_s14 = int_to_ptr.vmem [resolvable:$true] %s319_s14  ;;  %s322_s17 = int_to_ptr.hbm [resolvable:$true] %s321_s17 }
  0x15   :  { %v87_v5 = vld [vmem:[#allocation3 + $0x8] sm:$0xff]  ;;  %v358_v6 = vld [vmem:[#allocation8] ss:$0 sm:$0xff] }
  0x16   :  { %114 = vmatpush.msra.mxu0 %v90_v1  ;;  %343 = vmatpush.msra.mxu2 %v90_v1 }
  0x18   :  { %115 = vmatpush.msra.mxu0 %v89_v2  ;;  %344 = vmatpush.msra.mxu2 %v89_v2 }
  0x1a   :  { %116 = vmatpush.msra.mxu0 %v88_v3  ;;  %345 = vmatpush.msra.mxu2 %v88_v3 }
  0x1b   :  { %336 = vmatmul.msk.f32.vlgmr.msra.gmra.mxu0 %vm94_vm0, %v86_v4  ;;  %337 = vmatmul.msk.f32.vlgmr.msra.gmra.mxu2 %vm94_vm0, %v87_v5 }
  0x98   :  { %v118_v7 = vpop.f32.mrf.mxu0 }
  0x99   :  { %v561_v8 = vadd.f32 %v358_v6, %v118_v7 }
  0x9b   :  { %v564_v9 = vmul.f32 0.70710677, %v561_v8 }
  0x9d   :  { %v128_v10 = vmul.f32 %v564_v9, %v564_v9 }
  0x9e   :  { %v121_v11 = vpop.f32.mrf.mxu2 }
  0x9f   :  { %v129_v12 = vmin.f32 %v128_v10, 16.0  ;;  %v568_v13 = vadd.f32 %v358_v6, %v121_v11 }
  0xa1   :  { %v130_v14 = vmul.f32 2.1237322e-06, %v129_v12  ;;  %v571_v15 = vmul.f32 0.70710677, %v568_v13  ;;  %v141_v16 = vmul.f32 3.8918573e-05, %v129_v12 }
  0xa3   :  { %v168_v17 = vmul.f32 %v571_v15, %v571_v15  ;;  %v142_v18 = vadd.f32 0.001143296, %v141_v16  ;;  %v131_v19 = vadd.f32 0.00028619796, %v130_v14 }
  0xa5   :  { %v169_v20 = vmin.f32 %v168_v17, 16.0  ;;  %v143_v21 = vmul.f32 %v142_v18, %v129_v12  ;;  %v132_v25 = vmul.f32 %v131_v19, %v129_v12 }
  0xa7   :  { %v170_v22 = vmul.f32 2.1237322e-06, %v169_v20  ;;  %v181_v23 = vmul.f32 3.8918573e-05, %v169_v20  ;;  %v144_v24 = vadd.f32 0.014752088, %v143_v21 }
  0xa8   :  { %v133_v32 = vadd.f32 0.0036580483, %v132_v25 }
  0xa9   :  { %v171_v26 = vadd.f32 0.00028619796, %v170_v22  ;;  %v182_v27 = vadd.f32 0.001143296, %v181_v23  ;;  %v145_v28 = vmul.f32 %v144_v24, %v129_v12  ;;  %v125_v22 = vmul.f32 0.5, %v568_v13 }
  0xaa   :  { %v134_v38 = vmul.f32 %v133_v32, %v129_v12 }
  0xab   :  { %v172_v29 = vmul.f32 %v171_v26, %v169_v20  ;;  %v183_v30 = vmul.f32 %v182_v27, %v169_v20  ;;  %v146_v31 = vadd.f32 0.112945676, %v145_v28  ;;  %v124_v28 = vmul.f32 0.5, %v561_v8 }
  0xac   :  { %v135_v44 = vadd.f32 0.05243302, %v134_v38 }
  0xad   :  { %v173_v33 = vadd.f32 0.0036580483, %v172_v29  ;;  %v184_v34 = vadd.f32 0.014752088, %v183_v30  ;;  %v147_v35 = vmul.f32 %v146_v31, %v129_v12  ;;  %v506_v29 = vmov 32.0  }
  0xae   :  { %v136_v48 = vmul.f32 %v135_v44, %v129_v12  ;;  %v278_v44 = vld [vmem:[#allocation9 + $0x18] sm:$0xff] }
  0xaf   :  { %v185_v36 = vmul.f32 %v184_v34, %v169_v20  ;;  %v148_v37 = vadd.f32 0.4994258, %v147_v35  ;;  %v174_v39 = vmul.f32 %v173_v33, %v169_v20  ;;  %346 = vmatpush.msra.mxu3 %v278_v44  ;;  %302 = vmatpush.msra.mxu1 %v278_v44 }
  0xb0   :  { %v137_v52 = vadd.f32 0.18741608, %v136_v48  ;;  %v276_v48 = vld [vmem:[#allocation9 + $0x8] sm:$0xff] }
  0xb1   :  { %v186_v40 = vadd.f32 0.112945676, %v185_v36  ;;  %v149_v41 = vmul.f32 %v148_v37, %v129_v12  ;;  %v175_v45 = vadd.f32 0.05243302, %v174_v39 }
  0xb2   :  { %v138_v57 = vmul.f32 %v137_v52, %v129_v12 }
  0xb3   :  { %v187_v42 = vmul.f32 %v186_v40, %v169_v20  ;;  %v150_v43 = vadd.f32 1.0, %v149_v41  ;;  %v176_v49 = vmul.f32 %v175_v45, %v169_v20 }
  0xb4   :  { %v139_v1 = vadd.f32 1.1283791, %v138_v57 }
  0xb5   :  { %v188_v46 = vadd.f32 0.4994258, %v187_v42  ;;  %362 = vrcp.f32 %v150_v43  ;;  %v177_v53 = vadd.f32 0.18741608, %v176_v49  ;;  %v162_v62 = vand.u32 2147483648, %v150_v43 }
  0xb6   :  { %vm156_vm2 = vweird.f32 %v150_v43  ;;  %v160_v0 = vand.u32 2147483647, %v150_v43  ;;  %v140_v14 = vmul.f32 %v139_v1, %v564_v9  ;;  %v360_v1 = vld [vmem:[#allocation8 + $0x2] ss:$0 sm:$0xff] }
  0xb7   :  { %v189_v47 = vmul.f32 %v188_v46, %v169_v20  ;;  %v178_v58 = vmul.f32 %v177_v53, %v169_v20  ;;  %v163_v7 = vor.u32 1.1754944e-38, %v162_v62  ;;  %v277_v46 = vld [vmem:[#allocation9 + $0x10] sm:$0xff]  ;;  %v359_v62 = vld [vmem:[#allocation8 + $0x1] ss:$0 sm:$0xff] }
  0xb8   :  { %vm161_vm6 = vcmp.eq.f32.partialorder %v160_v0, 8.507059e+37  ;;  %347 = vmatpush.msra.mxu3 %v277_v46  ;;  %303 = vmatpush.msra.mxu1 %v277_v46 }
  0xb9   :  { %v190_v50 = vadd.f32 1.0, %v189_v47  ;;  %v179_v2 = vadd.f32 1.1283791, %v178_v58 }
  0xba   :  { %348 = vmatpush.msra.mxu3 %v276_v48  ;;  %304 = vmatpush.msra.mxu1 %v276_v48 }
  0xbb   :  { %364 = vrcp.f32 %v190_v50  ;;  %v363_v51 = vpop.eup %362  ;;  %v202_v3 = vand.u32 2147483648, %v190_v50  ;;  %v200_v5 = vand.u32 2147483647, %v190_v50  ;;  %vm196_vm5 = vweird.f32 %v190_v50 }
  0xbc   :  { %v152_v54 = vmul.f32 %v363_v51, %v150_v43  ;;  %vm157_vm1 = vweird.f32 %v363_v51  ;;  %v180_v16 = vmul.f32 %v179_v2, %v571_v15  ;;  %366 = vrcp.f32 %v506_v29 }
  0xbd   :  { %vm158_vm3 = vmor %vm156_vm2, %vm157_vm1  ;;  %v203_v11 = vor.u32 1.1754944e-38, %v202_v3  ;;  %vm201_vm8 = vcmp.eq.f32.partialorder %v200_v5, 8.507059e+37 }
  0xbe   :  { %v153_v55 = vsub.f32 1.0, %v152_v54 }
  0xc0   :  { %v154_v59 = vmul.f32 %v363_v51, %v153_v55 }
  0xc1   :  { %v365_v56 = vpop.eup %364 }
  0xc2   :  { %v192_v60 = vmul.f32 %v365_v56, %v190_v50  ;;  %v155_v61 = vadd.f32 %v363_v51, %v154_v59  ;;  %vm197_vm4 = vweird.f32 %v365_v56  ;;  %v367_v30 = vpop.eup %366  ;;  %v275_v50 = vld [vmem:[#allocation9] sm:$0xff] }
  0xc3   :  { %vm198_vm7 = vmor %vm196_vm5, %vm197_vm4  ;;  %v219_v31 = vmul.f32 32.0, %v367_v30  ;;  %vm223_vm9 = vweird.f32 %v367_v30  ;;  %349 = vmatpush.msra.mxu3 %v275_v50  ;;  %305 = vmatpush.msra.mxu1 %v275_v50 }
  0xc4   :  { %v193_v63 = vsub.f32 1.0, %v192_v60  ;;  %v159_v6 = vsel %vm158_vm3, %v363_v51, %v155_v61 }
  0xc5   :  { %v164_v12 = vsel %vm161_vm6, %v163_v7, %v159_v6  ;;  %v220_v32 = vsub.f32 1.0, %v219_v31 }
  0xc6   :  { %v194_v4 = vmul.f32 %v365_v56, %v193_v63  ;;  %v165_v20 = vmul.f32 %v164_v12, %v140_v14 }
  0xc7   :  { %v221_v33 = vmul.f32 %v367_v30, %v220_v32 }
  0xc8   :  { %v195_v10 = vadd.f32 %v365_v56, %v194_v4  ;;  %v338_v24 = vclamps-f32 %v165_v20, 1.0 }
  0xc9   :  { %v222_v13 = vadd.f32 %v367_v30, %v221_v33 }
  0xca   :  { %v199_v17 = vsel %vm198_vm7, %v365_v56, %v195_v10  ;;  %v208_v27 = vadd.f32 1.0, %v338_v24 }
  0xcb   :  { %v204_v18 = vsel %vm201_vm8, %v203_v11, %v199_v17  ;;  %v224_v34 = vsel %vm223_vm9, %v367_v30, %v222_v13 }
  0xcc   :  { %v205_v19 = vmul.f32 %v204_v18, %v180_v16  ;;  %v210_v9 = vmul.f32 %v208_v27, %v124_v28  ;;  %v361_v18 = vld [vmem:[%s600_s4] ss:$0 sm:$0xff] }
  0xce   :  { %v339_v21 = vclamps-f32 %v205_v19, 1.0  ;;  %v212_v15 = vsel %vm94_vm0, %v210_v9, 0.0 }
  0xd0   :  { %v209_v23 = vadd.f32 1.0, %v339_v21 }
  0xd2   :  { %v211_v25 = vmul.f32 %v209_v23, %v125_v22 }
  0xd4   :  { %v215_v26 = vsel %vm94_vm0, %v211_v25, 0.0 }
  0xd5   :  { %216 = vadd.xlane.f32.xlu0 %v215_v26 }
  0xdd   :  { %213 = vadd.xlane.f32.xlu0 %v212_v15 }
 0x148   :  { %v217_v35 = vpop.xlane.xlu0 %216 }
 0x149   :  { %v226_v36 = vmul.f32 %v224_v34, %v217_v35 }
 0x14b   :  { %v228_v37 = vsub.f32 %v211_v25, %v226_v36 }
 0x14d   :  { %v230_v38 = vmul.f32 %v228_v37, %v228_v37 }
 0x14f   :  { %v234_v39 = vsel %vm94_vm0, %v230_v38, 0.0 }
 0x150   :  { %235 = vadd.xlane.f32.xlu1 %v234_v39  ;;  %v214_v8 = vpop.xlane.xlu0 %213 }
 0x151   :  { %v225_v40 = vmul.f32 %v224_v34, %v214_v8 }
 0x153   :  { %v227_v41 = vsub.f32 %v210_v9, %v225_v40 }
 0x155   :  { %v229_v42 = vmul.f32 %v227_v41, %v227_v41 }
 0x157   :  { %v231_v43 = vsel %vm94_vm0, %v229_v42, 0.0 }
 0x158   :  { %232 = vadd.xlane.f32.xlu1 %v231_v43 }
 0x1c3   :  { %v236_v45 = vpop.xlane.xlu1 %235 }
 0x1c4   :  { %v238_v47 = vmul.f32 %v236_v45, %v224_v34 }
 0x1c6   :  { %v240_v49 = vadd.f32 1e-05, %v238_v47 }
 0x1c8   :  { %368 = vrsqrt.f32 %v240_v49  ;;  %vm257_vm11 = vweird.f32 %v240_v49 }
 0x1cb   :  { %v233_v51 = vpop.xlane.xlu1 %232 }
 0x1cc   :  { %v237_v52 = vmul.f32 %v233_v51, %v224_v34 }
 0x1ce   :  { %v369_v53 = vpop.eup %368  ;;  %v239_v54 = vadd.f32 1e-05, %v237_v52 }
 0x1cf   :  { %v252_v55 = vmul.f32 %v369_v53, %v240_v49  ;;  %vm258_vm10 = vweird.f32 %v369_v53 }
 0x1d0   :  { %370 = vrsqrt.f32 %v239_v54  ;;  %vm259_vm12 = vmor %vm257_vm11, %vm258_vm10  ;;  %vm247_vm14 = vweird.f32 %v239_v54 }
 0x1d1   :  { %v253_v56 = vmul.f32 %v369_v53, %v252_v55 }
 0x1d3   :  { %v254_v57 = vmul.f32 0.5, %v253_v56 }
 0x1d5   :  { %v255_v58 = vsub.f32 1.5, %v254_v57 }
 0x1d6   :  { %v371_v59 = vpop.eup %370 }
 0x1d7   :  { %v256_v60 = vmul.f32 %v369_v53, %v255_v58  ;;  %v242_v61 = vmul.f32 %v371_v59, %v239_v54  ;;  %vm248_vm13 = vweird.f32 %v371_v59 }
 0x1d8   :  { %vm249_vm15 = vmor %vm247_vm14, %vm248_vm13 }
 0x1d9   :  { %v260_v63 = vsel %vm259_vm12, %v369_v53, %v256_v60  ;;  %v243_v0 = vmul.f32 %v371_v59, %v242_v61 }
 0x1da   :  { %v262_v2 = vmul.f32 %v260_v63, %v228_v37 }
 0x1db   :  { %v244_v3 = vmul.f32 0.5, %v243_v0 }
 0x1dc   :  { %v266_v4 = vmul.f32 %v359_v62, %v262_v2 }
 0x1dd   :  { %v245_v5 = vsub.f32 1.5, %v244_v3 }
 0x1de   :  { %v270_v6 = vadd.f32 %v360_v1, %v266_v4 }
 0x1df   :  { %v246_v7 = vmul.f32 %v371_v59, %v245_v5 }
 0x1e0   :  { %272 = vst.msk [vmem:[#allocation2 + $0x8] sm:$0xff] %vm94_vm0, %v270_v6 }
 0x1e1   :  { %v250_v10 = vsel %vm249_vm15, %v371_v59, %v246_v7 }
 0x1e2   :  { %v261_v11 = vmul.f32 %v250_v10, %v227_v41 }
 0x1e4   :  { %v265_v12 = vmul.f32 %v359_v62, %v261_v11 }
 0x1e6   :  { %v269_v14 = vadd.f32 %v360_v1, %v265_v12 }
 0x1e7   :  { %v274_v16 = vld [vmem:[#allocation2 + $0x8] sm:$0xff] }
 0x1e8   :  { %271 = vst.msk [vmem:[#allocation2] sm:$0xff] %vm94_vm0, %v269_v14  ;;  %341 = vmatmul.msk.f32.vlgmr.msra.gmra.mxu3 %vm94_vm0, %v274_v16 }
 0x1ef   :  { %v273_v17 = vld [vmem:[#allocation2] sm:$0xff] }
 0x1f0   :  { %340 = vmatmul.msk.f32.vlgmr.msra.gmra.mxu1 %vm94_vm0, %v273_v17 }
 0x26b   :  { %v310_v19 = vpop.f32.mrf.mxu3 }
 0x26c   :  { %v311_v20 = vadd.f32 %v361_v18, %v310_v19 }
 0x26d   :  { %v307_v21 = vpop.f32.mrf.mxu1 }
 0x26e   :  { %314 = vst [vmem:[#allocation11 + $0x8] sm:$0xff] %v311_v20  ;;  %v308_v22 = vadd.f32 %v361_v18, %v307_v21 }
 0x270   :  { %313 = vst [vmem:[#allocation11] sm:$0xff] %v308_v22 }
 0x271   :  { %327 = dma.vmem_to_hbm [thread:$0]  %s320_s14, 256, %s322_s17, [#allocation5], %s501_s26, %s501_s26, %s502_s27  }
 0x272   :  { %498 = dma.done.wait [#allocation5], 256  }
 0x273   :  { %499 = vsyncadd [#allocation5], 4294967040 }
 0x274   :  { %332 = vsyncpa [#allocation4], 1 }
 0x275   :  { %333 = vsyncpa [#allocation7], 1 }
 0x276   :  { %334 = vsyncpa [#allocation10], 1 }
 0x277   :  { %335 = vsyncpa [#allocation5], 1 }

</bundles_post_ra>
